<compile_context>
chip_gen: v5e
topology: v5e:2x2
jax: 0.10.0
libtpu: 0.0.40
codegen_flags: <defaults>
</compile_context>

<pallas_src>
import jax
import jax.numpy as jnp
from jax.experimental import pallas as pl
from jax.experimental.pallas import tpu as pltpu


# ---------------------------------------------------------------------------
# helpers
# ---------------------------------------------------------------------------

def _round_up(x, m):
    return ((x + m - 1) // m) * m


def _vmem_cap_bytes():
    """Usable VMEM budget for this TPU generation (leave ~25% headroom)."""
    try:
        cap = int(pltpu.get_tpu_info().vmem_capacity_bytes)
    except Exception:
        cap = 64 * 2 ** 20          # conservative (v7x) if the query fails
    return (cap * 3) // 4           # ~96 MiB on v5e/v6e, ~48 MiB on v7x


def _choose_batch_tile(B, max_block_b=1024):
    """Batch tile for the fused path.

    Small batches: one full-extent tile (no padding, trivially legal).
    Large batches: MXU-aligned (multiple of 256) and <= ceil(B/2) so the
    "parallel" batch axis has >= 2 grid steps (keeps both v7x TCs busy).
    """
    if B <= 256:
        return B
    tb = min(max_block_b, _round_up(pl.cdiv(B, 2), 256))
    return max(256, (tb // 256) * 256)


def _contraction_tile(K, cap=512):
    """Largest lane-aligned (multiple of 128) tile dividing K exactly, else K.

    The contraction axis must be tiled exactly: a padded partial K block would
    accumulate garbage into valid output rows.
    """
    if K <= cap:
        return K
    for t in range(cap - cap % 128, 0, -128):
        if K % t == 0:
            return t
    return K


# ---------------------------------------------------------------------------
# path 1: fused, weight-resident kernel (1-D grid over batch)
# ---------------------------------------------------------------------------

def _make_fused_kernel(num_layers):
    """refs = (x, w0, b0, w1, b1, ..., out)."""

    def kernel(*refs):
        x_ref, out_ref = refs[0], refs[-1]
        params = refs[1:-1]
        x = x_ref[...]                                     # (TB, d_in) bf16
        for layer in range(num_layers):
            w = params[2 * layer][...]                     # (din, dout) bf16
            b = params[2 * layer + 1][...]                 # (1, dout)  f32
            y = jnp.dot(x, w, preferred_element_type=jnp.float32) + b
            if layer < num_layers - 1:
                y = jnp.maximum(y, 0.0)                    # relu (f32, VPU)
                x = y.astype(jnp.bfloat16)                 # bf16 for next MXU pass
            else:
                x = y                                      # last layer: no act
        out_ref[...] = x.astype(out_ref.dtype)

    return kernel


def _resident_spec(shape, pipeline_mode):
    if pipeline_mode is None:
        return pl.BlockSpec(shape, lambda i: (0, 0))
    return pl.BlockSpec(shape, lambda i: (0, 0), pipeline_mode=pipeline_mode)


def _fused_mlp_call(x_bf, ws, bs, tb, out_dtype, vmem_limit, cost,
                    weight_pipeline_mode):
    B, d_in = x_bf.shape
    d_out = ws[-1].shape[1]
    in_specs = [pl.BlockSpec((tb, d_in), lambda i: (i, 0))]
    args = [x_bf]
    for w, b in zip(ws, bs):
        in_specs.append(_resident_spec(w.shape, weight_pipeline_mode))
        in_specs.append(_resident_spec(b.shape, weight_pipeline_mode))
        args += [w, b]
    return pl.pallas_call(
        _make_fused_kernel(len(ws)),
        out_shape=jax.ShapeDtypeStruct((B, d_out), out_dtype),
        grid=(pl.cdiv(B, tb),),
        in_specs=in_specs,
        out_specs=pl.BlockSpec((tb, d_out), lambda i: (i, 0)),
        compiler_params=pltpu.CompilerParams(
            dimension_semantics=("parallel",),
            vmem_limit_bytes=int(vmem_limit)),
        cost_estimate=cost,
    )(*args)


# ---------------------------------------------------------------------------
# path 2: streamed per-layer (M, N, K)-tiled linear kernel (wide layers)
# ---------------------------------------------------------------------------

def _make_linear_kernel(apply_relu):
    def kernel(x_ref, w_ref, b_ref, o_ref, acc_ref):
        k = pl.program_id(2)

        @pl.when(k == 0)
        def _():
            acc_ref[...] = jnp.zeros_like(acc_ref)

        acc_ref[...] += jnp.dot(x_ref[...], w_ref[...],
                                preferred_element_type=jnp.float32)

        @pl.when(k == pl.num_programs(2) - 1)
        def _():
            y = acc_ref[...] + b_ref[...]
            if apply_relu:
                y = jnp.maximum(y, 0.0)
            o_ref[...] = y.astype(o_ref.dtype)

    return kernel


def _tiled_linear(x, w, b, *, apply_relu, out_dtype, vmem_cap,
                  tm_cap=256, tn_cap=512, tk_cap=512):
    M, K = x.shape
    _, N = w.shape
    tm = M if M <= tm_cap else tm_cap        # partial last M block is clipped
    tn = N if N <= tn_cap else tn_cap        # partial last N block is clipped
    tk = _contraction_tile(K, tk_cap)        # must divide K exactly
    grid = (pl.cdiv(M, tm), pl.cdiv(N, tn), K // tk)

    out_bytes = jnp.dtype(out_dtype).itemsize
    tile_bytes = (2 * (tm * tk * 2 + tk * tn * 2 + tn * 4)   # dbl-buffered inputs
                  + 2 * tm * tn * out_bytes                  # dbl-buffered output
                  + tm * tn * 4)                             # f32 accumulator
    vmem_limit = int(min(max(2 * tile_bytes, 16 * 2 ** 20), vmem_cap))

    return pl.pallas_call(
        _make_linear_kernel(apply_relu),
        out_shape=jax.ShapeDtypeStruct((M, N), out_dtype),
        grid=grid,
        in_specs=[pl.BlockSpec((tm, tk), lambda i, j, k: (i, k)),
                  pl.BlockSpec((tk, tn), lambda i, j, k: (k, j)),
                  pl.BlockSpec((1, tn), lambda i, j, k: (0, j))],
        out_specs=pl.BlockSpec((tm, tn), lambda i, j, k: (i, j)),
        scratch_shapes=[pltpu.VMEM((tm, tn), jnp.float32)],
        compiler_params=pltpu.CompilerParams(
            dimension_semantics=("parallel", "parallel", "arbitrary"),
            vmem_limit_bytes=vmem_limit),
    )(x, w, b)


def _streamed_mlp(x_bf, ws, bs, out_dtype, vmem_cap):
    h = x_bf
    n = len(ws)
    for i, (w, b) in enumerate(zip(ws, bs)):
        last = (i == n - 1)
        h = _tiled_linear(h, w, b, apply_relu=not last,
                          out_dtype=out_dtype if last else jnp.bfloat16,
                          vmem_cap=vmem_cap)
    return h


# ---------------------------------------------------------------------------
# wrapper
# ---------------------------------------------------------------------------

def mlp_forward(x, weights, biases, *, activation="relu", dropout=0.0,
                out_dtype=jnp.bfloat16, max_block_b=1024,
                force_streaming=False):
    """Pallas MLP forward.

    x:       (B, input_dim)
    weights: list of (d_in, d_out)  (pre-transposed vs PyTorch's (out, in))
    biases:  list of (d_out,)
    Returns (B, dimensions[-1]) in out_dtype (bf16 default: the kernel is
    HBM-bound at fusion-MLP widths; pass jnp.float32 to match PyTorch dtype).
    """
    if activation != "relu":
        raise NotImplementedError("only relu activation implemented")
    if dropout != 0.0:
        raise NotImplementedError("dropout > 0 not implemented")

    B, d_in = x.shape
    dims = [w.shape[1] for w in weights]
    d_out = dims[-1]

    # bf16 matmul operands (cast once in the wrapper so HBM copies are bf16);
    # biases stay f32 and broadcast as (1, dout) rows inside the kernel.
    x_bf = x.astype(jnp.bfloat16)
    ws = [w.astype(jnp.bfloat16) for w in weights]
    bs = [b.reshape(1, -1).astype(jnp.float32) for b in biases]

    vmem_cap = _vmem_cap_bytes()
    tb = _choose_batch_tile(B, max_block_b)

    # Conservative fused-path VMEM estimate (assumes default double-buffering
    # even though single-buffered resident weights are requested below).
    out_bytes = jnp.dtype(out_dtype).itemsize
    max_dim = max([d_in] + dims)
    w_bytes = sum(w.size for w in ws) * 2
    b_bytes = sum(b.size for b in bs) * 4
    vmem_need = (2 * (w_bytes + b_bytes)              # 2 pipeline bufs (worst case)
                 + 2 * tb * d_in * 2                  # dbl-buffered bf16 input tiles
                 + 2 * tb * d_out * out_bytes         # dbl-buffered output tiles
                 + 3 * tb * max_dim * 4)              # live f32 intermediates

    if force_streaming or vmem_need > vmem_cap:
        # Residency gate: weights too wide for VMEM -> stream layer by layer.
        return _streamed_mlp(x_bf, ws, bs, out_dtype, vmem_cap)

    layer_dims = list(zip([d_in] + dims[:-1], dims))
    cost = pl.CostEstimate(
        flops=2 * B * sum(di * do for di, do in layer_dims),
        transcendentals=0,
        bytes_accessed=(x_bf.size * 2 + w_bytes + b_bytes
                        + B * d_out * out_bytes))
    vmem_limit = min(max(vmem_need + vmem_need // 4, 16 * 2 ** 20), vmem_cap)

    try:
        # Single-buffer resident weights/biases (constant index maps): halves
        # their VMEM footprint (matters most on v7x's 64 MiB VMEM).
        return _fused_mlp_call(x_bf, ws, bs, tb, out_dtype, vmem_limit, cost,
                               weight_pipeline_mode=pl.Buffered(1))
    except Exception:
        # JAX version without single-buffer support: default double-buffering
        # is still correct and covered by the conservative VMEM estimate.
        return _fused_mlp_call(x_bf, ws, bs, tb, out_dtype, vmem_limit, cost,
                               weight_pipeline_mode=None)


def mlp_ref(x, weights, biases):
    h = x
    for i, (w, b) in enumerate(zip(weights, biases)):
        h = h @ w + b
        if i < len(weights) - 1:
            h = jnp.maximum(h, 0.0)
    return h


if __name__ == "__main__":
    # Small, TPU-friendly shapes consistent with the module:
    #   input_dim = 128, dimensions = (256, 128), batch = 16
    B = 16
    INPUT_DIM = 128
    DIMENSIONS = (256, 128)

    key = jax.random.PRNGKey(0)
    keys = jax.random.split(key, 1 + 2 * len(DIMENSIONS))

    x = jax.random.normal(keys[0], (B, INPUT_DIM), dtype=jnp.float32)

    # nn.Linear-like init (uniform +/- 1/sqrt(fan_in)), stored as (in, out).
    weights, biases = [], []
    din = INPUT_DIM
    ki = 1
    for dout in DIMENSIONS:
        bound = float(din) ** -0.5
        weights.append(jax.random.uniform(keys[ki], (din, dout), jnp.float32,
                                          -bound, bound))
        biases.append(jax.random.uniform(keys[ki + 1], (dout,), jnp.float32,
                                         -bound, bound))
        ki += 2
        din = dout

    y_ref = mlp_ref(x, weights, biases)

    # Fused, weight-resident path (default).
    y = jax.block_until_ready(mlp_forward(x, weights, biases))
    assert y.shape == (B, DIMENSIONS[-1])
    err = float(jnp.max(jnp.abs(y.astype(jnp.float32) - y_ref)))
    assert jnp.allclose(y.astype(jnp.float32), y_ref, atol=5e-2, rtol=5e-2), \
        f"fused mismatch: {err}"

    # Streamed (per-layer K/N-tiled) fallback path for non-resident widths.
    y2 = jax.block_until_ready(
        mlp_forward(x, weights, biases, force_streaming=True))
    err2 = float(jnp.max(jnp.abs(y2.astype(jnp.float32) - y_ref)))
    assert jnp.allclose(y2.astype(jnp.float32), y_ref, atol=5e-2, rtol=5e-2), \
        f"streamed mismatch: {err2}"

    print("KERNEL_OK")
</pallas_src>

<mosaic_0001>
module attributes {stable_mosaic.version = 11 : i64} {
  func.func @kernel(%arg0: i32, %arg1: memref<16x128xbf16, #tpu.memory_space<vmem>>, %arg2: memref<128x256xbf16, #tpu.memory_space<vmem>>, %arg3: memref<1x256xf32, #tpu.memory_space<vmem>>, %arg4: memref<256x128xbf16, #tpu.memory_space<vmem>>, %arg5: memref<1x128xf32, #tpu.memory_space<vmem>>, %arg6: memref<16x128xbf16, #tpu.memory_space<vmem>>) attributes {dimension_semantics = [#tpu.dimension_semantics<parallel>], iteration_bounds = array<i64: 1>, scalar_prefetch = 0 : i64, scratch_operands = 0 : i64, tpu.core_type = #tpu.core_type<tc>, window_params = [{transform_indices = @transform_0, window_bounds = array<i64: 16, 128>}, {pipeline_mode = #tpu.pipeline_mode<synchronous>, transform_indices = @transform_1, window_bounds = array<i64: 128, 256>}, {pipeline_mode = #tpu.pipeline_mode<synchronous>, transform_indices = @transform_2, window_bounds = array<i64: 1, 256>}, {pipeline_mode = #tpu.pipeline_mode<synchronous>, transform_indices = @transform_3, window_bounds = array<i64: 256, 128>}, {pipeline_mode = #tpu.pipeline_mode<synchronous>, transform_indices = @transform_4, window_bounds = array<i64: 1, 128>}, {transform_indices = @transform_5, window_bounds = array<i64: 16, 128>}]} {
    %c0 = arith.constant 0 : index
    %c0_0 = arith.constant 0 : index
    %0 = vector.load %arg1[%c0, %c0_0] : memref<16x128xbf16, #tpu.memory_space<vmem>>, vector<16x128xbf16>
    %c0_1 = arith.constant 0 : index
    %c0_2 = arith.constant 0 : index
    %1 = vector.load %arg2[%c0_1, %c0_2] : memref<128x256xbf16, #tpu.memory_space<vmem>>, vector<128x256xbf16>
    %c0_3 = arith.constant 0 : index
    %c0_4 = arith.constant 0 : index
    %2 = vector.load %arg3[%c0_3, %c0_4] : memref<1x256xf32, #tpu.memory_space<vmem>>, vector<1x256xf32>
    %cst = arith.constant dense<0.000000e+00> : vector<16x256xf32>
    %3 = tpu.matmul %0, %1, %cst {dimension_numbers = #tpu.dot_dimension_numbers<[1], [0], [0], [1], [0, 0, 1, 1], [], []>} : vector<16x128xbf16>, vector<128x256xbf16>, vector<16x256xf32> -> vector<16x256xf32>
    %4 = vector.broadcast %2 : vector<1x256xf32> to vector<16x256xf32>
    %5 = arith.addf %3, %4 : vector<16x256xf32>
    %cst_5 = arith.constant 0.000000e+00 : f32
    %6 = vector.broadcast %cst_5 : f32 to vector<16x256xf32>
    %7 = arith.maximumf %5, %6 : vector<16x256xf32>
    %8 = arith.truncf %7 : vector<16x256xf32> to vector<16x256xbf16>
    %c0_6 = arith.constant 0 : index
    %c0_7 = arith.constant 0 : index
    %9 = vector.load %arg4[%c0_6, %c0_7] : memref<256x128xbf16, #tpu.memory_space<vmem>>, vector<256x128xbf16>
    %c0_8 = arith.constant 0 : index
    %c0_9 = arith.constant 0 : index
    %10 = vector.load %arg5[%c0_8, %c0_9] : memref<1x128xf32, #tpu.memory_space<vmem>>, vector<1x128xf32>
    %cst_10 = arith.constant dense<0.000000e+00> : vector<16x128xf32>
    %11 = tpu.matmul %8, %9, %cst_10 {dimension_numbers = #tpu.dot_dimension_numbers<[1], [0], [0], [1], [0, 0, 1, 1], [], []>} : vector<16x256xbf16>, vector<256x128xbf16>, vector<16x128xf32> -> vector<16x128xf32>
    %12 = vector.broadcast %10 : vector<1x128xf32> to vector<16x128xf32>
    %13 = arith.addf %11, %12 : vector<16x128xf32>
    %14 = arith.truncf %13 : vector<16x128xf32> to vector<16x128xbf16>
    %c0_11 = arith.constant 0 : index
    %c0_12 = arith.constant 0 : index
    %15 = vector.load %arg6[%c0_11, %c0_12] : memref<16x128xbf16, #tpu.memory_space<vmem>>, vector<16x128xbf16>
    tpu.vector_store %arg6[%c0_11, %c0_12], %14 {strides = array<i32>} : memref<16x128xbf16, #tpu.memory_space<vmem>>, vector<16x128xbf16>,
    return
  }
  func.func @transform_0(%arg0: i32) -> (i32, i32) {
    %c0_i32 = arith.constant 0 : i32
    %c0_i32_0 = arith.constant 0 : i32
    return %arg0, %c0_i32 : i32, i32
  }
  func.func @transform_1(%arg0: i32) -> (i32, i32) {
    %c0_i32 = arith.constant 0 : i32
    %c0_i32_0 = arith.constant 0 : i32
    %c0_i32_1 = arith.constant 0 : i32
    return %c0_i32, %c0_i32_0 : i32, i32
  }
  func.func @transform_2(%arg0: i32) -> (i32, i32) {
    %c0_i32 = arith.constant 0 : i32
    %c0_i32_0 = arith.constant 0 : i32
    %c0_i32_1 = arith.constant 0 : i32
    return %c0_i32, %c0_i32_0 : i32, i32
  }
  func.func @transform_3(%arg0: i32) -> (i32, i32) {
    %c0_i32 = arith.constant 0 : i32
    %c0_i32_0 = arith.constant 0 : i32
    %c0_i32_1 = arith.constant 0 : i32
    return %c0_i32, %c0_i32_0 : i32, i32
  }
  func.func @transform_4(%arg0: i32) -> (i32, i32) {
    %c0_i32 = arith.constant 0 : i32
    %c0_i32_0 = arith.constant 0 : i32
    %c0_i32_1 = arith.constant 0 : i32
    return %c0_i32, %c0_i32_0 : i32, i32
  }
  func.func @transform_5(%arg0: i32) -> (i32, i32) {
    %c0_i32 = arith.constant 0 : i32
    %c0_i32_0 = arith.constant 0 : i32
    return %arg0, %c0_i32 : i32, i32
  }
}

module attributes {stable_mosaic.version = 11 : i64} {
  func.func @kernel(%arg0: i32, %arg1: memref<16x128xbf16, #tpu.memory_space<vmem>>, %arg2: memref<128x256xbf16, #tpu.memory_space<vmem>>, %arg3: memref<1x256xf32, #tpu.memory_space<vmem>>, %arg4: memref<256x128xbf16, #tpu.memory_space<vmem>>, %arg5: memref<1x128xf32, #tpu.memory_space<vmem>>, %arg6: memref<16x128xbf16, #tpu.memory_space<vmem>>) attributes {dimension_semantics = [#tpu.dimension_semantics<parallel>], iteration_bounds = array<i64: 1>, scalar_prefetch = 0 : i64, scratch_operands = 0 : i64, tpu.core_type = #tpu.core_type<tc>, window_params = [{transform_indices = @transform_0, window_bounds = array<i64: 16, 128>}, {pipeline_mode = #tpu.pipeline_mode<synchronous>, transform_indices = @transform_1, window_bounds = array<i64: 128, 256>}, {pipeline_mode = #tpu.pipeline_mode<synchronous>, transform_indices = @transform_2, window_bounds = array<i64: 1, 256>}, {pipeline_mode = #tpu.pipeline_mode<synchronous>, transform_indices = @transform_3, window_bounds = array<i64: 256, 128>}, {pipeline_mode = #tpu.pipeline_mode<synchronous>, transform_indices = @transform_4, window_bounds = array<i64: 1, 128>}, {transform_indices = @transform_5, window_bounds = array<i64: 16, 128>}]} {
    %c0 = arith.constant 0 : index
    %c0_0 = arith.constant 0 : index
    %0 = vector.load %arg1[%c0, %c0_0] : memref<16x128xbf16, #tpu.memory_space<vmem>>, vector<16x128xbf16>
    %c0_1 = arith.constant 0 : index
    %c0_2 = arith.constant 0 : index
    %1 = vector.load %arg2[%c0_1, %c0_2] : memref<128x256xbf16, #tpu.memory_space<vmem>>, vector<128x256xbf16>
    %c0_3 = arith.constant 0 : index
    %c0_4 = arith.constant 0 : index
    %2 = vector.load %arg3[%c0_3, %c0_4] : memref<1x256xf32, #tpu.memory_space<vmem>>, vector<1x256xf32>
    %cst = arith.constant dense<0.000000e+00> : vector<16x256xf32>
    %3 = tpu.matmul %0, %1, %cst {dimension_numbers = #tpu.dot_dimension_numbers<[1], [0], [0], [1], [0, 0, 1, 1], [], []>} : vector<16x128xbf16>, vector<128x256xbf16>, vector<16x256xf32> -> vector<16x256xf32>
    %4 = vector.broadcast %2 : vector<1x256xf32> to vector<16x256xf32>
    %5 = arith.addf %3, %4 : vector<16x256xf32>
    %cst_5 = arith.constant 0.000000e+00 : f32
    %6 = vector.broadcast %cst_5 : f32 to vector<16x256xf32>
    %7 = arith.maximumf %5, %6 : vector<16x256xf32>
    %8 = arith.truncf %7 : vector<16x256xf32> to vector<16x256xbf16>
    %c0_6 = arith.constant 0 : index
    %c0_7 = arith.constant 0 : index
    %9 = vector.load %arg4[%c0_6, %c0_7] : memref<256x128xbf16, #tpu.memory_space<vmem>>, vector<256x128xbf16>
    %c0_8 = arith.constant 0 : index
    %c0_9 = arith.constant 0 : index
    %10 = vector.load %arg5[%c0_8, %c0_9] : memref<1x128xf32, #tpu.memory_space<vmem>>, vector<1x128xf32>
    %cst_10 = arith.constant dense<0.000000e+00> : vector<16x128xf32>
    %11 = tpu.matmul %8, %9, %cst_10 {dimension_numbers = #tpu.dot_dimension_numbers<[1], [0], [0], [1], [0, 0, 1, 1], [], []>} : vector<16x256xbf16>, vector<256x128xbf16>, vector<16x128xf32> -> vector<16x128xf32>
    %12 = vector.broadcast %10 : vector<1x128xf32> to vector<16x128xf32>
    %13 = arith.addf %11, %12 : vector<16x128xf32>
    %14 = arith.truncf %13 : vector<16x128xf32> to vector<16x128xbf16>
    %c0_11 = arith.constant 0 : index
    %c0_12 = arith.constant 0 : index
    %15 = vector.load %arg6[%c0_11, %c0_12] : memref<16x128xbf16, #tpu.memory_space<vmem>>, vector<16x128xbf16>
    tpu.vector_store %arg6[%c0_11, %c0_12], %14 {strides = array<i32>} : memref<16x128xbf16, #tpu.memory_space<vmem>>, vector<16x128xbf16>,
    return
  }
  func.func @transform_0(%arg0: i32) -> (i32, i32) {
    %c0_i32 = arith.constant 0 : i32
    %c0_i32_0 = arith.constant 0 : i32
    return %arg0, %c0_i32 : i32, i32
  }
  func.func @transform_1(%arg0: i32) -> (i32, i32) {
    %c0_i32 = arith.constant 0 : i32
    %c0_i32_0 = arith.constant 0 : i32
    %c0_i32_1 = arith.constant 0 : i32
    return %c0_i32, %c0_i32_0 : i32, i32
  }
  func.func @transform_2(%arg0: i32) -> (i32, i32) {
    %c0_i32 = arith.constant 0 : i32
    %c0_i32_0 = arith.constant 0 : i32
    %c0_i32_1 = arith.constant 0 : i32
    return %c0_i32, %c0_i32_0 : i32, i32
  }
  func.func @transform_3(%arg0: i32) -> (i32, i32) {
    %c0_i32 = arith.constant 0 : i32
    %c0_i32_0 = arith.constant 0 : i32
    %c0_i32_1 = arith.constant 0 : i32
    return %c0_i32, %c0_i32_0 : i32, i32
  }
  func.func @transform_4(%arg0: i32) -> (i32, i32) {
    %c0_i32 = arith.constant 0 : i32
    %c0_i32_0 = arith.constant 0 : i32
    %c0_i32_1 = arith.constant 0 : i32
    return %c0_i32, %c0_i32_0 : i32, i32
  }
  func.func @transform_5(%arg0: i32) -> (i32, i32) {
    %c0_i32 = arith.constant 0 : i32
    %c0_i32_0 = arith.constant 0 : i32
    return %arg0, %c0_i32 : i32, i32
  }
}

</mosaic_0001>

<bundles_post_ra>
// kernel: tpu_custom_call.1
= control target key start
LH: loop header
LB: loop body
LE: loop exit
PB: predicated region body
PF: predicated region fallthrough
CT: control target
= control target key end

     0   :  { %10 = vsyncpa [#allocation3], 0  ;;  %s785_s0 = inlined_call_operand.hbm [shape: bf16[16,128], index: 0, kind: input, shape index: {}]   ;;  %s786_s1 = inlined_call_operand.hbm [shape: bf16[128,256], index: 1, kind: input, shape index: {}]   ;;  %s787_s2 = inlined_call_operand.hbm [shape: f32[1,256], index: 2, kind: input, shape index: {}]   ;;  %s788_s3 = inlined_call_operand.hbm [shape: bf16[256,128], index: 3, kind: input, shape index: {}]   ;;  %s789_s4 = inlined_call_operand.vmem [shape: f32[1,128], index: 4, kind: input, shape index: {}]   ;;  %s790_s5 = inlined_call_operand.hbm [shape: bf16[16,128], index: 5, kind: output, shape index: {}]  }
   0x1   :  { %11 = vsyncpa [#allocation6], 0 }
   0x2   :  { %12 = vsyncpa [#allocation9], 0  ;;  %s31_s20 = sshll.u32 %s786_s1, 4  ;;  %s32_s20 = int_to_ptr.hbm [resolvable:$true] %s31_s20 }
   0x3   :  { %13 = vsyncpa [#allocation4], 0  ;;  %s719_s21 = smov [#allocation5]   ;;  %s18_s25 = sshll.u32 %s785_s0, 4  ;;  %s19_s25 = int_to_ptr.hbm [resolvable:$true] %s18_s25 }
   0x4   :  { %s33_s22 = sshll.u32 %s719_s21, 4  ;;  %s720_s26 = smov 128   ;;  %s34_s22 = int_to_ptr.vmem [resolvable:$true] %s33_s22 }
   0x5   :  { %s721_s27 = smov 8   ;;  %s722_s28 = smov [#allocation2]  }
   0x6   :  { %39 = dma.hbm_to_vmem [thread:$0]  %s32_s20, 2048, %s34_s22, [#allocation6], %s720_s26, %s720_s26, %s721_s27  }
   0x7   :  { %s20_s29 = sshll.u32 %s722_s28, 4  ;;  %s723_s30 = smov 64   ;;  %s21_s29 = int_to_ptr.vmem [resolvable:$true] %s20_s29 }
   0x8   :  { %s724_s6 = smov 4   ;;  %s45_s8 = sshll.u32 %s787_s2, 4  ;;  %s46_s8 = int_to_ptr.hbm [resolvable:$true] %s45_s8 }
   0x9   :  { %26 = dma.hbm_to_vmem [thread:$0]  %s19_s25, 128, %s21_s29, [#allocation3], %s723_s30, %s723_s30, %s724_s6  }
   0xa   :  { %s725_s9 = smov [#allocation7]   ;;  %s55_s12 = sshll.u32 %s788_s3, 4  ;;  %s56_s12 = int_to_ptr.hbm [resolvable:$true] %s55_s12 }
   0xb   :  { %s47_s0 = sshll.u32 %s725_s9, 4  ;;  %s726_s13 = smov [#allocation8]   ;;  %s48_s0 = int_to_ptr.vmem [resolvable:$true] %s47_s0 }
   0xc   :  { %50 = dma.hbm_to_vmem [thread:$0]  %s46_s8, 32, %s48_s0, [#allocation6]  }
   0xd   :  { %s57_s14 = sshll.u32 %s726_s13, 4  ;;  %s58_s14 = int_to_ptr.vmem [resolvable:$true] %s57_s14 }
   0xe   :  { %63 = dma.hbm_to_vmem [thread:$0]  %s56_s12, 2048, %s58_s14, [#allocation9], %s723_s30, %s723_s30, %s724_s6  }
   0xf   :  { %711 = dma.done.wait [#allocation3], 128  }
  0x10   :  { %712 = vsyncadd [#allocation3], 4294967168 }
  0x11   :  { %713 = dma.done.wait [#allocation6], 2080  }
  0x12   :  { %714 = vsyncadd [#allocation6], 4294965216 }
  0x13   :  { %715 = dma.done.wait [#allocation9], 2048  }
  0x14   :  { %716 = vsyncadd [#allocation9], 4294965248  ;;  %v473_v0 = vld [vmem:[#allocation5 + $0x70] sm:$0xf]  ;;  %v559_v1 = vld [vmem:[#allocation5 + $0x74] sm:$0xf0] }
  0x15   :  { %v558_v2 = vld [vmem:[#allocation5 + $0x74] sm:$0xf]  ;;  %v474_v3 = vor.u32 %v559_v1, %v473_v0  ;;  %v475_v4 = vld [vmem:[#allocation5 + $0x78] sm:$0xf0]  ;;  %v465_v5 = vld [vmem:[#allocation5 + $0x60] sm:$0xf] }
  0x16   :  { %v557_v6 = vld [vmem:[#allocation5 + $0x64] sm:$0xf0]  ;;  %v478_v7 = vor.u32 %v558_v2, %v475_v4  ;;  %v556_v8 = vld [vmem:[#allocation5 + $0x64] sm:$0xf]  ;;  %v467_v9 = vld [vmem:[#allocation5 + $0x68] sm:$0xf0] }
  0x17   :  { %192 = vmatpush.bf16.msra.mxu0 %v474_v3  ;;  %v466_v10 = vor.u32 %v557_v6, %v465_v5  ;;  %v470_v11 = vor.u32 %v556_v8, %v467_v9  ;;  %v457_v12 = vld [vmem:[#allocation5 + $0x50] sm:$0xf]  ;;  %v555_v13 = vld [vmem:[#allocation5 + $0x54] sm:$0xf0]  ;;  %v554_v14 = vld [vmem:[#allocation5 + $0x54] sm:$0xf] }
  0x18   :  { %206 = vmatpush.bf16.msra.mxu1 %v478_v7  ;;  %v459_v15 = vld [vmem:[#allocation5 + $0x58] sm:$0xf0]  ;;  %v458_v16 = vor.u32 %v555_v13, %v457_v12  ;;  %v449_v18 = vld [vmem:[#allocation5 + $0x40] sm:$0xf]  ;;  %v553_v19 = vld [vmem:[#allocation5 + $0x44] sm:$0xf0] }
  0x19   :  { %v462_v17 = vor.u32 %v554_v14, %v459_v15  ;;  %v552_v20 = vld [vmem:[#allocation5 + $0x44] sm:$0xf]  ;;  %v451_v21 = vld [vmem:[#allocation5 + $0x48] sm:$0xf0]  ;;  %v450_v22 = vor.u32 %v553_v19, %v449_v18  ;;  %v567_v23 = vld [vmem:[#allocation8 + $0x38] sm:$0xff]  ;;  %s727_s15 = smov [#allocation10]  }
  0x1a   :  { %v575_v24 = vld [vmem:[#allocation8 + $0x78] sm:$0xff]  ;;  %v454_v25 = vor.u32 %v552_v20, %v451_v21  ;;  %v441_v26 = vld [vmem:[#allocation5 + $0x30] sm:$0xf]  ;;  %v550_v28 = vld [vmem:[#allocation5 + $0x34] sm:$0xf]  ;;  %358 = vmatpush.bf16.msra.mxu2 %v567_v23  ;;  %s394_s16 = sshll.u32 %s727_s15, 4  ;;  %s395_s16 = int_to_ptr.vmem [resolvable:$true] %s394_s16 }
  0x1b   :  { %193 = vmatpush.bf16.msra.mxu0 %v466_v10  ;;  %v551_v27 = vld [vmem:[#allocation5 + $0x34] sm:$0xf0]  ;;  %v443_v29 = vld [vmem:[#allocation5 + $0x38] sm:$0xf0]  ;;  %372 = vmatpush.bf16.msra.mxu3 %v575_v24  ;;  %v433_v34 = vld [vmem:[#allocation5 + $0x20] sm:$0xf] }
  0x1c   :  { %207 = vmatpush.bf16.msra.mxu1 %v470_v11  ;;  %v566_v30 = vld [vmem:[#allocation8 + $0x30] sm:$0xff]  ;;  %v442_v32 = vor.u32 %v551_v27, %v441_v26  ;;  %v446_v33 = vor.u32 %v550_v28, %v443_v29  ;;  %v549_v35 = vld [vmem:[#allocation5 + $0x24] sm:$0xf0]  ;;  %v548_v36 = vld [vmem:[#allocation5 + $0x24] sm:$0xf]  ;;  %s396_s19 = sshll.u32 %s790_s5, 4  ;;  %s397_s19 = int_to_ptr.hbm [resolvable:$true] %s396_s19 }
  0x1d   :  { %v574_v31 = vld [vmem:[#allocation8 + $0x70] sm:$0xff]  ;;  %v435_v37 = vld [vmem:[#allocation5 + $0x28] sm:$0xf0]  ;;  %v434_v40 = vor.u32 %v549_v35, %v433_v34  ;;  %v427_v45 = vld [vmem:[#allocation5 + $0x18] sm:$0xf0] }
  0x1e   :  { %359 = vmatpush.bf16.msra.mxu2 %v566_v30  ;;  %v565_v38 = vld [vmem:[#allocation8 + $0x28] sm:$0xff]  ;;  %v438_v41 = vor.u32 %v548_v36, %v435_v37  ;;  %v547_v43 = vld [vmem:[#allocation5 + $0x14] sm:$0xf0]  ;;  %v546_v44 = vld [vmem:[#allocation5 + $0x14] sm:$0xf] }
  0x1f   :  { %194 = vmatpush.bf16.msra.mxu0 %v458_v16  ;;  %373 = vmatpush.bf16.msra.mxu3 %v574_v31  ;;  %v573_v39 = vld [vmem:[#allocation8 + $0x68] sm:$0xff]  ;;  %v564_v46 = vld [vmem:[#allocation8 + $0x20] sm:$0xff]  ;;  %v430_v49 = vor.u32 %v546_v44, %v427_v45  ;;  %v543_v56 = vld [vmem:[#allocation2] sm:$0xff] }
  0x20   :  { %208 = vmatpush.bf16.msra.mxu1 %v462_v17  ;;  %v425_v42 = vld [vmem:[#allocation5 + $0x10] sm:$0xf]  ;;  %v572_v47 = vld [vmem:[#allocation8 + $0x60] sm:$0xff]  ;;  %v419_v53 = vld [vmem:[#allocation5 + $0x8] sm:$0xf0] }
  0x21   :  { %v426_v48 = vor.u32 %v547_v43, %v425_v42  ;;  %v417_v50 = vld [vmem:[#allocation5] sm:$0xf]  ;;  %v545_v51 = vld [vmem:[#allocation5 + $0x4] sm:$0xf0]  ;;  %v544_v52 = vld [vmem:[#allocation5 + $0x4] sm:$0xf] }
  0x22   :  { %360 = vmatpush.bf16.msra.mxu2 %v565_v38  ;;  %v418_v54 = vor.u32 %v545_v51, %v417_v50  ;;  %v422_v55 = vor.u32 %v544_v52, %v419_v53  ;;  %v563_v57 = vld [vmem:[#allocation8 + $0x18] sm:$0xff]  ;;  %v562_v59 = vld [vmem:[#allocation8 + $0x10] sm:$0xff]  ;;  %v561_v61 = vld [vmem:[#allocation8 + $0x8] sm:$0xff] }
  0x23   :  { %195 = vmatpush.bf16.msra.mxu0 %v450_v22  ;;  %374 = vmatpush.bf16.msra.mxu3 %v573_v39  ;;  %v571_v58 = vld [vmem:[#allocation8 + $0x58] sm:$0xff]  ;;  %v570_v60 = vld [vmem:[#allocation8 + $0x50] sm:$0xff]  ;;  %v569_v62 = vld [vmem:[#allocation8 + $0x48] sm:$0xff] }
  0x24   :  { %209 = vmatpush.bf16.msra.mxu1 %v454_v25  ;;  %v560_v63 = vld [vmem:[#allocation8] sm:$0xff]  ;;  %v100_v1 = vld [vmem:[#allocation7] sm:$0x3]  ;;  %v590_v20 = vld [vmem:[%s789_s4] ss:$0 sm:$0xff] }
  0x25   :  { %v568_v0 = vld [vmem:[#allocation8 + $0x40] sm:$0xff]  ;;  %v102_v4 = vperm.slane %v100_v1, 0  ;;  %v103_v5 = vperm.slane %v100_v1, 1 }
  0x26   :  { %361 = vmatpush.bf16.msra.mxu2 %v564_v46 }
  0x27   :  { %196 = vmatpush.bf16.msra.mxu0 %v442_v32  ;;  %375 = vmatpush.bf16.msra.mxu3 %v572_v47 }
  0x28   :  { %210 = vmatpush.bf16.msra.mxu1 %v446_v33 }
  0x2a   :  { %362 = vmatpush.bf16.msra.mxu2 %v563_v57 }
  0x2b   :  { %197 = vmatpush.bf16.msra.mxu0 %v434_v40  ;;  %376 = vmatpush.bf16.msra.mxu3 %v571_v58 }
  0x2c   :  { %211 = vmatpush.bf16.msra.mxu1 %v438_v41 }
  0x2e   :  { %363 = vmatpush.bf16.msra.mxu2 %v562_v59 }
  0x2f   :  { %198 = vmatpush.bf16.msra.mxu0 %v426_v48  ;;  %377 = vmatpush.bf16.msra.mxu3 %v570_v60 }
  0x30   :  { %212 = vmatpush.bf16.msra.mxu1 %v430_v49 }
  0x32   :  { %364 = vmatpush.bf16.msra.mxu2 %v561_v61 }
  0x33   :  { %199 = vmatpush.bf16.msra.mxu0 %v418_v54  ;;  %378 = vmatpush.bf16.msra.mxu3 %v569_v62 }
  0x34   :  { %213 = vmatpush.bf16.msra.mxu1 %v422_v55 }
  0x36   :  { %200 = vmatmul.bf16.vlgmr.msra.gmra.mxu0 %v543_v56  ;;  %365 = vmatpush.bf16.msra.mxu2 %v560_v63 }
  0x37   :  { %214 = vmatmul.bf16.vlgmr.msra.gmra.mxu1 %v543_v56  ;;  %379 = vmatpush.bf16.msra.mxu3 %v568_v0 }
  0xb3   :  { %v201_v2 = vpop.f32.mrf.mxu0 }
  0xb4   :  { %v215_v3 = vpop.f32.mrf.mxu1  ;;  %v202_v6 = vadd.f32 %v201_v2, %v102_v4 }
  0xb5   :  { %v216_v7 = vadd.f32 %v215_v3, %v103_v5 }
  0xb6   :  { %v220_v12 = vmax.f32 %v202_v6, 0.0 }
  0xb7   :  { %v221_v14 = vmax.f32 %v216_v7, 0.0 }
  0xbb   :  { %v203_v8 = vpop.f32.mrf.mxu0 }
  0xbc   :  { %v204_v9 = vadd.f32 %v203_v8, %v102_v4  ;;  %v217_v10 = vpop.f32.mrf.mxu1 }
  0xbd   :  { %v218_v11 = vadd.f32 %v217_v10, %v103_v5 }
  0xbe   :  { %v222_v13 = vmax.f32 %v204_v9, 0.0 }
  0xbf   :  { %v223_v15 = vmax.f32 %v218_v11, 0.0 }
  0xc0   :  { %v224_v16 = vpack.c.bf16 %v222_v13, %v220_v12 }
  0xc1   :  { %v225_v17 = vpack.c.bf16 %v223_v15, %v221_v14 }
  0xc2   :  { %366 = vmatmul.bf16.vlgmr.msra.gmra.mxu2 %v224_v16 }
  0xc3   :  { %380 = vmatmul.bf16.vlgmr.msra.gmra.mxu3 %v225_v17 }
 0x145   :  { %v367_v18 = vpop.f32.mrf.mxu2 }
 0x146   :  { %v381_v19 = vpop.f32.mrf.mxu3  ;;  %v368_v21 = vadd.f32 %v590_v20, %v367_v18 }
 0x148   :  { %v382_v25 = vadd.f32 %v381_v19, %v368_v21 }
 0x14d   :  { %v369_v22 = vpop.f32.mrf.mxu2 }
 0x14e   :  { %v370_v23 = vadd.f32 %v590_v20, %v369_v22  ;;  %v383_v24 = vpop.f32.mrf.mxu3 }
 0x150   :  { %v384_v26 = vadd.f32 %v383_v24, %v370_v23 }
 0x152   :  { %v579_v27 = vpack.c.bf16 %v384_v26, %v382_v25 }
 0x154   :  { %580 = vst [vmem:[#allocation10] sm:$0xff] %v579_v27  }
 0x155   :  { %402 = dma.vmem_to_hbm [thread:$0]  %s395_s16, 128, %s397_s19, [#allocation4], %s723_s30, %s723_s30, %s724_s6  }
 0x156   :  { %717 = dma.done.wait [#allocation4], 128  }
 0x157   :  { %718 = vsyncadd [#allocation4], 4294967168 }
 0x158   :  { %407 = vsyncpa [#allocation3], 1 }
 0x159   :  { %408 = vsyncpa [#allocation6], 1 }
 0x15a   :  { %409 = vsyncpa [#allocation9], 1 }
 0x15b   :  { %410 = vsyncpa [#allocation4], 1 }

// kernel: tpu_custom_call.1
= control target key start
LH: loop header
LB: loop body
LE: loop exit
PB: predicated region body
PF: predicated region fallthrough
CT: control target
= control target key end

     0   :  { %10 = vsyncpa [#allocation3], 0  ;;  %s785_s0 = inlined_call_operand.hbm [shape: bf16[16,128], index: 0, kind: input, shape index: {}]   ;;  %s786_s1 = inlined_call_operand.hbm [shape: bf16[128,256], index: 1, kind: input, shape index: {}]   ;;  %s787_s2 = inlined_call_operand.hbm [shape: f32[1,256], index: 2, kind: input, shape index: {}]   ;;  %s788_s3 = inlined_call_operand.hbm [shape: bf16[256,128], index: 3, kind: input, shape index: {}]   ;;  %s789_s4 = inlined_call_operand.vmem [shape: f32[1,128], index: 4, kind: input, shape index: {}]   ;;  %s790_s5 = inlined_call_operand.hbm [shape: bf16[16,128], index: 5, kind: output, shape index: {}]  }
   0x1   :  { %11 = vsyncpa [#allocation6], 0 }
   0x2   :  { %12 = vsyncpa [#allocation9], 0  ;;  %s31_s20 = sshll.u32 %s786_s1, 4  ;;  %s32_s20 = int_to_ptr.hbm [resolvable:$true] %s31_s20 }
   0x3   :  { %13 = vsyncpa [#allocation4], 0  ;;  %s719_s21 = smov [#allocation5]   ;;  %s18_s25 = sshll.u32 %s785_s0, 4  ;;  %s19_s25 = int_to_ptr.hbm [resolvable:$true] %s18_s25 }
   0x4   :  { %s33_s22 = sshll.u32 %s719_s21, 4  ;;  %s720_s26 = smov 128   ;;  %s34_s22 = int_to_ptr.vmem [resolvable:$true] %s33_s22 }
   0x5   :  { %s721_s27 = smov 8   ;;  %s722_s28 = smov [#allocation2]  }
   0x6   :  { %39 = dma.hbm_to_vmem [thread:$0]  %s32_s20, 2048, %s34_s22, [#allocation6], %s720_s26, %s720_s26, %s721_s27  }
   0x7   :  { %s20_s29 = sshll.u32 %s722_s28, 4  ;;  %s723_s30 = smov 64   ;;  %s21_s29 = int_to_ptr.vmem [resolvable:$true] %s20_s29 }
   0x8   :  { %s724_s6 = smov 4   ;;  %s45_s8 = sshll.u32 %s787_s2, 4  ;;  %s46_s8 = int_to_ptr.hbm [resolvable:$true] %s45_s8 }
   0x9   :  { %26 = dma.hbm_to_vmem [thread:$0]  %s19_s25, 128, %s21_s29, [#allocation3], %s723_s30, %s723_s30, %s724_s6  }
   0xa   :  { %s725_s9 = smov [#allocation7]   ;;  %s55_s12 = sshll.u32 %s788_s3, 4  ;;  %s56_s12 = int_to_ptr.hbm [resolvable:$true] %s55_s12 }
   0xb   :  { %s47_s0 = sshll.u32 %s725_s9, 4  ;;  %s726_s13 = smov [#allocation8]   ;;  %s48_s0 = int_to_ptr.vmem [resolvable:$true] %s47_s0 }
   0xc   :  { %50 = dma.hbm_to_vmem [thread:$0]  %s46_s8, 32, %s48_s0, [#allocation6]  }
   0xd   :  { %s57_s14 = sshll.u32 %s726_s13, 4  ;;  %s58_s14 = int_to_ptr.vmem [resolvable:$true] %s57_s14 }
   0xe   :  { %63 = dma.hbm_to_vmem [thread:$0]  %s56_s12, 2048, %s58_s14, [#allocation9], %s723_s30, %s723_s30, %s724_s6  }
   0xf   :  { %711 = dma.done.wait [#allocation3], 128  }
  0x10   :  { %712 = vsyncadd [#allocation3], 4294967168 }
  0x11   :  { %713 = dma.done.wait [#allocation6], 2080  }
  0x12   :  { %714 = vsyncadd [#allocation6], 4294965216 }
  0x13   :  { %715 = dma.done.wait [#allocation9], 2048  }
  0x14   :  { %716 = vsyncadd [#allocation9], 4294965248  ;;  %v473_v0 = vld [vmem:[#allocation5 + $0x70] sm:$0xf]  ;;  %v559_v1 = vld [vmem:[#allocation5 + $0x74] sm:$0xf0] }
  0x15   :  { %v558_v2 = vld [vmem:[#allocation5 + $0x74] sm:$0xf]  ;;  %v474_v3 = vor.u32 %v559_v1, %v473_v0  ;;  %v475_v4 = vld [vmem:[#allocation5 + $0x78] sm:$0xf0]  ;;  %v465_v5 = vld [vmem:[#allocation5 + $0x60] sm:$0xf] }
  0x16   :  { %v557_v6 = vld [vmem:[#allocation5 + $0x64] sm:$0xf0]  ;;  %v478_v7 = vor.u32 %v558_v2, %v475_v4  ;;  %v556_v8 = vld [vmem:[#allocation5 + $0x64] sm:$0xf]  ;;  %v467_v9 = vld [vmem:[#allocation5 + $0x68] sm:$0xf0] }
  0x17   :  { %192 = vmatpush.bf16.msra.mxu0 %v474_v3  ;;  %v466_v10 = vor.u32 %v557_v6, %v465_v5  ;;  %v470_v11 = vor.u32 %v556_v8, %v467_v9  ;;  %v457_v12 = vld [vmem:[#allocation5 + $0x50] sm:$0xf]  ;;  %v555_v13 = vld [vmem:[#allocation5 + $0x54] sm:$0xf0]  ;;  %v554_v14 = vld [vmem:[#allocation5 + $0x54] sm:$0xf] }
  0x18   :  { %206 = vmatpush.bf16.msra.mxu1 %v478_v7  ;;  %v459_v15 = vld [vmem:[#allocation5 + $0x58] sm:$0xf0]  ;;  %v458_v16 = vor.u32 %v555_v13, %v457_v12  ;;  %v449_v18 = vld [vmem:[#allocation5 + $0x40] sm:$0xf]  ;;  %v553_v19 = vld [vmem:[#allocation5 + $0x44] sm:$0xf0] }
  0x19   :  { %v462_v17 = vor.u32 %v554_v14, %v459_v15  ;;  %v552_v20 = vld [vmem:[#allocation5 + $0x44] sm:$0xf]  ;;  %v451_v21 = vld [vmem:[#allocation5 + $0x48] sm:$0xf0]  ;;  %v450_v22 = vor.u32 %v553_v19, %v449_v18  ;;  %v567_v23 = vld [vmem:[#allocation8 + $0x38] sm:$0xff]  ;;  %s727_s15 = smov [#allocation10]  }
  0x1a   :  { %v575_v24 = vld [vmem:[#allocation8 + $0x78] sm:$0xff]  ;;  %v454_v25 = vor.u32 %v552_v20, %v451_v21  ;;  %v441_v26 = vld [vmem:[#allocation5 + $0x30] sm:$0xf]  ;;  %v550_v28 = vld [vmem:[#allocation5 + $0x34] sm:$0xf]  ;;  %358 = vmatpush.bf16.msra.mxu2 %v567_v23  ;;  %s394_s16 = sshll.u32 %s727_s15, 4  ;;  %s395_s16 = int_to_ptr.vmem [resolvable:$true] %s394_s16 }
  0x1b   :  { %193 = vmatpush.bf16.msra.mxu0 %v466_v10  ;;  %v551_v27 = vld [vmem:[#allocation5 + $0x34] sm:$0xf0]  ;;  %v443_v29 = vld [vmem:[#allocation5 + $0x38] sm:$0xf0]  ;;  %372 = vmatpush.bf16.msra.mxu3 %v575_v24  ;;  %v433_v34 = vld [vmem:[#allocation5 + $0x20] sm:$0xf] }
  0x1c   :  { %207 = vmatpush.bf16.msra.mxu1 %v470_v11  ;;  %v566_v30 = vld [vmem:[#allocation8 + $0x30] sm:$0xff]  ;;  %v442_v32 = vor.u32 %v551_v27, %v441_v26  ;;  %v446_v33 = vor.u32 %v550_v28, %v443_v29  ;;  %v549_v35 = vld [vmem:[#allocation5 + $0x24] sm:$0xf0]  ;;  %v548_v36 = vld [vmem:[#allocation5 + $0x24] sm:$0xf]  ;;  %s396_s19 = sshll.u32 %s790_s5, 4  ;;  %s397_s19 = int_to_ptr.hbm [resolvable:$true] %s396_s19 }
  0x1d   :  { %v574_v31 = vld [vmem:[#allocation8 + $0x70] sm:$0xff]  ;;  %v435_v37 = vld [vmem:[#allocation5 + $0x28] sm:$0xf0]  ;;  %v434_v40 = vor.u32 %v549_v35, %v433_v34  ;;  %v427_v45 = vld [vmem:[#allocation5 + $0x18] sm:$0xf0] }
  0x1e   :  { %359 = vmatpush.bf16.msra.mxu2 %v566_v30  ;;  %v565_v38 = vld [vmem:[#allocation8 + $0x28] sm:$0xff]  ;;  %v438_v41 = vor.u32 %v548_v36, %v435_v37  ;;  %v547_v43 = vld [vmem:[#allocation5 + $0x14] sm:$0xf0]  ;;  %v546_v44 = vld [vmem:[#allocation5 + $0x14] sm:$0xf] }
  0x1f   :  { %194 = vmatpush.bf16.msra.mxu0 %v458_v16  ;;  %373 = vmatpush.bf16.msra.mxu3 %v574_v31  ;;  %v573_v39 = vld [vmem:[#allocation8 + $0x68] sm:$0xff]  ;;  %v564_v46 = vld [vmem:[#allocation8 + $0x20] sm:$0xff]  ;;  %v430_v49 = vor.u32 %v546_v44, %v427_v45  ;;  %v543_v56 = vld [vmem:[#allocation2] sm:$0xff] }
  0x20   :  { %208 = vmatpush.bf16.msra.mxu1 %v462_v17  ;;  %v425_v42 = vld [vmem:[#allocation5 + $0x10] sm:$0xf]  ;;  %v572_v47 = vld [vmem:[#allocation8 + $0x60] sm:$0xff]  ;;  %v419_v53 = vld [vmem:[#allocation5 + $0x8] sm:$0xf0] }
  0x21   :  { %v426_v48 = vor.u32 %v547_v43, %v425_v42  ;;  %v417_v50 = vld [vmem:[#allocation5] sm:$0xf]  ;;  %v545_v51 = vld [vmem:[#allocation5 + $0x4] sm:$0xf0]  ;;  %v544_v52 = vld [vmem:[#allocation5 + $0x4] sm:$0xf] }
  0x22   :  { %360 = vmatpush.bf16.msra.mxu2 %v565_v38  ;;  %v418_v54 = vor.u32 %v545_v51, %v417_v50  ;;  %v422_v55 = vor.u32 %v544_v52, %v419_v53  ;;  %v563_v57 = vld [vmem:[#allocation8 + $0x18] sm:$0xff]  ;;  %v562_v59 = vld [vmem:[#allocation8 + $0x10] sm:$0xff]  ;;  %v561_v61 = vld [vmem:[#allocation8 + $0x8] sm:$0xff] }
  0x23   :  { %195 = vmatpush.bf16.msra.mxu0 %v450_v22  ;;  %374 = vmatpush.bf16.msra.mxu3 %v573_v39  ;;  %v571_v58 = vld [vmem:[#allocation8 + $0x58] sm:$0xff]  ;;  %v570_v60 = vld [vmem:[#allocation8 + $0x50] sm:$0xff]  ;;  %v569_v62 = vld [vmem:[#allocation8 + $0x48] sm:$0xff] }
  0x24   :  { %209 = vmatpush.bf16.msra.mxu1 %v454_v25  ;;  %v560_v63 = vld [vmem:[#allocation8] sm:$0xff]  ;;  %v100_v1 = vld [vmem:[#allocation7] sm:$0x3]  ;;  %v590_v20 = vld [vmem:[%s789_s4] ss:$0 sm:$0xff] }
  0x25   :  { %v568_v0 = vld [vmem:[#allocation8 + $0x40] sm:$0xff]  ;;  %v102_v4 = vperm.slane %v100_v1, 0  ;;  %v103_v5 = vperm.slane %v100_v1, 1 }
  0x26   :  { %361 = vmatpush.bf16.msra.mxu2 %v564_v46 }
  0x27   :  { %196 = vmatpush.bf16.msra.mxu0 %v442_v32  ;;  %375 = vmatpush.bf16.msra.mxu3 %v572_v47 }
  0x28   :  { %210 = vmatpush.bf16.msra.mxu1 %v446_v33 }
  0x2a   :  { %362 = vmatpush.bf16.msra.mxu2 %v563_v57 }
  0x2b   :  { %197 = vmatpush.bf16.msra.mxu0 %v434_v40  ;;  %376 = vmatpush.bf16.msra.mxu3 %v571_v58 }
  0x2c   :  { %211 = vmatpush.bf16.msra.mxu1 %v438_v41 }
  0x2e   :  { %363 = vmatpush.bf16.msra.mxu2 %v562_v59 }
  0x2f   :  { %198 = vmatpush.bf16.msra.mxu0 %v426_v48  ;;  %377 = vmatpush.bf16.msra.mxu3 %v570_v60 }
  0x30   :  { %212 = vmatpush.bf16.msra.mxu1 %v430_v49 }
  0x32   :  { %364 = vmatpush.bf16.msra.mxu2 %v561_v61 }
  0x33   :  { %199 = vmatpush.bf16.msra.mxu0 %v418_v54  ;;  %378 = vmatpush.bf16.msra.mxu3 %v569_v62 }
  0x34   :  { %213 = vmatpush.bf16.msra.mxu1 %v422_v55 }
  0x36   :  { %200 = vmatmul.bf16.vlgmr.msra.gmra.mxu0 %v543_v56  ;;  %365 = vmatpush.bf16.msra.mxu2 %v560_v63 }
  0x37   :  { %214 = vmatmul.bf16.vlgmr.msra.gmra.mxu1 %v543_v56  ;;  %379 = vmatpush.bf16.msra.mxu3 %v568_v0 }
  0xb3   :  { %v201_v2 = vpop.f32.mrf.mxu0 }
  0xb4   :  { %v215_v3 = vpop.f32.mrf.mxu1  ;;  %v202_v6 = vadd.f32 %v201_v2, %v102_v4 }
  0xb5   :  { %v216_v7 = vadd.f32 %v215_v3, %v103_v5 }
  0xb6   :  { %v220_v12 = vmax.f32 %v202_v6, 0.0 }
  0xb7   :  { %v221_v14 = vmax.f32 %v216_v7, 0.0 }
  0xbb   :  { %v203_v8 = vpop.f32.mrf.mxu0 }
  0xbc   :  { %v204_v9 = vadd.f32 %v203_v8, %v102_v4  ;;  %v217_v10 = vpop.f32.mrf.mxu1 }
  0xbd   :  { %v218_v11 = vadd.f32 %v217_v10, %v103_v5 }
  0xbe   :  { %v222_v13 = vmax.f32 %v204_v9, 0.0 }
  0xbf   :  { %v223_v15 = vmax.f32 %v218_v11, 0.0 }
  0xc0   :  { %v224_v16 = vpack.c.bf16 %v222_v13, %v220_v12 }
  0xc1   :  { %v225_v17 = vpack.c.bf16 %v223_v15, %v221_v14 }
  0xc2   :  { %366 = vmatmul.bf16.vlgmr.msra.gmra.mxu2 %v224_v16 }
  0xc3   :  { %380 = vmatmul.bf16.vlgmr.msra.gmra.mxu3 %v225_v17 }
 0x145   :  { %v367_v18 = vpop.f32.mrf.mxu2 }
 0x146   :  { %v381_v19 = vpop.f32.mrf.mxu3  ;;  %v368_v21 = vadd.f32 %v590_v20, %v367_v18 }
 0x148   :  { %v382_v25 = vadd.f32 %v381_v19, %v368_v21 }
 0x14d   :  { %v369_v22 = vpop.f32.mrf.mxu2 }
 0x14e   :  { %v370_v23 = vadd.f32 %v590_v20, %v369_v22  ;;  %v383_v24 = vpop.f32.mrf.mxu3 }
 0x150   :  { %v384_v26 = vadd.f32 %v383_v24, %v370_v23 }
 0x152   :  { %v579_v27 = vpack.c.bf16 %v384_v26, %v382_v25 }
 0x154   :  { %580 = vst [vmem:[#allocation10] sm:$0xff] %v579_v27  }
 0x155   :  { %402 = dma.vmem_to_hbm [thread:$0]  %s395_s16, 128, %s397_s19, [#allocation4], %s723_s30, %s723_s30, %s724_s6  }
 0x156   :  { %717 = dma.done.wait [#allocation4], 128  }
 0x157   :  { %718 = vsyncadd [#allocation4], 4294967168 }
 0x158   :  { %407 = vsyncpa [#allocation3], 1 }
 0x159   :  { %408 = vsyncpa [#allocation6], 1 }
 0x15a   :  { %409 = vsyncpa [#allocation9], 1 }
 0x15b   :  { %410 = vsyncpa [#allocation4], 1 }

</bundles_post_ra>
